<compile_context>
chip_gen: v5e
topology: v5e:2x2
jax: 0.10.0
libtpu: 0.0.40
codegen_flags: <defaults>
</compile_context>

<pallas_src>
import functools

import jax
import jax.numpy as jnp
from jax import lax
from jax.experimental import pallas as pl
from jax.experimental.pallas import tpu as pltpu


def _round_up(v, m):
    return ((v + m - 1) // m) * m


def _cdiv(a, b):
    return (a + b - 1) // b


@functools.lru_cache(maxsize=None)
def _tpu_config():
    """Per-generation tile / VMEM-limit defaults. Conservative if the query fails."""
    vmem_bytes = 64 * 1024 * 1024  # assume v7x-class (smallest VMEM) on failure
    try:
        info = pltpu.get_tpu_info()
        vmem_bytes = int(getattr(info, "vmem_capacity_bytes", vmem_bytes))
    except Exception:
        pass
    if vmem_bytes <= 64 * 1024 * 1024:
        # v7x: 64 MiB VMEM / TC, 2 TCs, ~3.2 TB/s HBM -> smaller tiles tolerated,
        # but make sure the parallel grid can be split across both cores.
        return dict(tm=512, tn=1024, tk=1024,
                    vmem_limit=48 * 1024 * 1024, two_core=True)
    # v5e / v6e: 128 MiB VMEM, 1 TC -> big tiles for maximum weight/x reuse.
    return dict(tm=1024, tn=1024, tk=1024,
                vmem_limit=64 * 1024 * 1024, two_core=False)


def _pick_tile(dim, tile_default, align):
    """Aligned tile <= default that keeps padding waste small (~same #blocks)."""
    if dim <= tile_default:
        return max(align, _round_up(dim, align))
    nblocks = _cdiv(dim, tile_default)
    return _round_up(_cdiv(dim, nblocks), align)


def dense_relu_kernel(x_ref, w_ref, b_ref, o_ref, *, compute_dtype, precision):
    """One (tm, tn) output tile, accumulating in place over the K grid axis.

    x_ref: (tm, tk)  activations
    w_ref: (tk, tn)  weight, already transposed to MXU-canonical (K, N) layout
    b_ref: (1,  tn)  bias
    o_ref: (tm, tn)  f32 output block == accumulator (resident across K)
    """
    k = pl.program_id(2)

    @pl.when(k == 0)
    def _init():
        o_ref[...] = jnp.zeros_like(o_ref)

    x = x_ref[...].astype(compute_dtype)
    w = w_ref[...].astype(compute_dtype)
    # y[m, n] += sum_k x[m, k] * w[k, n]  — canonical contraction, no transpose.
    o_ref[...] += lax.dot_general(
        x, w,
        dimension_numbers=(((1,), (0,)), ((), ())),
        preferred_element_type=jnp.float32,
        precision=precision,
    )

    @pl.when(k == pl.num_programs(2) - 1)
    def _finalize():
        # Bias add + ReLU only once, after the full K reduction.
        y = o_ref[...] + b_ref[...].astype(jnp.float32)
        o_ref[...] = jnp.maximum(y, 0.0)


@functools.partial(
    jax.jit,
    static_argnames=("tm", "tn", "tk", "vmem_limit", "two_core", "precision"))
def _forward_impl(x, weight, bias, *, tm, tn, tk, vmem_limit, two_core, precision):
    B, K = x.shape
    N, K2 = weight.shape
    assert K == K2 and bias.shape == (N,)

    # Native-bf16 fast path (full-rate MXU, half the HBM/VMEM bytes per step)
    # only when BOTH operands are bf16; otherwise compute in f32 (x.float() parity).
    if x.dtype == jnp.bfloat16 and weight.dtype == jnp.bfloat16:
        compute_dtype = jnp.bfloat16
    else:
        compute_dtype = jnp.float32

    # Adaptive tile clamp: (8, 128)-aligned, minimal padding waste.
    tm = _pick_tile(B, tm, 8)
    tn = _pick_tile(N, tn, 128)
    tk = _pick_tile(K, tk, 128)

    # v7x megacore: ensure the parallel (M, N) grid has >= 2 blocks so both
    # TensorCores get work whenever the problem is large enough to split.
    if two_core and _cdiv(B, tm) * _cdiv(N, tn) < 2:
        if tm >= 16 and B > tm // 2:
            tm = _round_up(tm // 2, 8)
        elif tn >= 256 and N > tn // 2:
            tn //= 2

    Bp = _round_up(B, tm)
    Np = _round_up(N, tn)
    Kp = _round_up(K, tk)

    # Pad once to lane-dense, tile-aligned shapes; fold the one-time weight
    # transpose to (K, N) into the same pass.  Zero K-pads contribute 0 to the
    # matmul and padded output columns give relu(0 + 0) = 0 (sliced off below).
    if (Bp, Kp) != (B, K):
        x = jnp.pad(x, ((0, Bp - B), (0, Kp - K)))
    w_t = jnp.pad(weight.T, ((0, Kp - K), (0, Np - N)))
    if Np != N:
        bias = jnp.pad(bias, (0, Np - N))
    bias2d = bias.reshape(1, Np)

    grid = (Bp // tm, Np // tn, Kp // tk)

    cost = pl.CostEstimate(
        flops=2 * Bp * Np * Kp,
        transcendentals=0,
        bytes_accessed=(Bp * Kp * x.dtype.itemsize
                        + Kp * Np * w_t.dtype.itemsize
                        + Np * bias.dtype.itemsize
                        + Bp * Np * 4),
    )

    kernel = functools.partial(dense_relu_kernel,
                               compute_dtype=compute_dtype,
                               precision=precision)

    out = pl.pallas_call(
        kernel,
        out_shape=jax.ShapeDtypeStruct((Bp, Np), jnp.float32),
        grid_spec=pltpu.PrefetchScalarGridSpec(
            num_scalar_prefetch=0,
            grid=grid,
            in_specs=[
                pl.BlockSpec((tm, tk), lambda i, j, k: (i, k)),   # x
                pl.BlockSpec((tk, tn), lambda i, j, k: (k, j)),   # weight.T (K, N)
                pl.BlockSpec((1, tn), lambda i, j, k: (0, j)),    # bias
            ],
            out_specs=pl.BlockSpec((tm, tn), lambda i, j, k: (i, j)),
        ),
        compiler_params=pltpu.CompilerParams(
            dimension_semantics=("parallel", "parallel", "arbitrary"),
            vmem_limit_bytes=vmem_limit,
        ),
        cost_estimate=cost,
    )(x, w_t, bias2d)

    if (Bp, Np) != (B, N):
        out = out[:B, :N]
    return out


def middle_model_forward(x, weight, bias, *, tm=None, tn=None, tk=None,
                         precision=None):
    """relu(x.float() @ weight.T + bias)  — PyTorch nn.Linear + ReLU semantics.

    x:      (B, K)  any float dtype
    weight: (N, K)  PyTorch (out_features, in_features) layout
    bias:   (N,)
    Pass precision=lax.Precision.HIGHEST for strict f32 GEMM parity at large K.
    """
    cfg = _tpu_config()
    return _forward_impl(
        x, weight, bias,
        tm=cfg["tm"] if tm is None else tm,
        tn=cfg["tn"] if tn is None else tn,
        tk=cfg["tk"] if tk is None else tk,
        vmem_limit=cfg["vmem_limit"],
        two_core=cfg["two_core"],
        precision=precision,
    )


def init_params(input_size, key):
    """Deterministic init matching nn.Linear + xavier_uniform_ on the weight."""
    kw, kb = jax.random.split(key)
    a = (6.0 / (input_size + input_size)) ** 0.5  # xavier/glorot uniform bound
    weight = jax.random.uniform(kw, (input_size, input_size),
                                minval=-a, maxval=a, dtype=jnp.float32)
    bb = 1.0 / (input_size ** 0.5)  # PyTorch Linear default bias init
    bias = jax.random.uniform(kb, (input_size,),
                              minval=-bb, maxval=bb, dtype=jnp.float32)
    return weight, bias


if __name__ == "__main__":
    key = jax.random.PRNGKey(0)
    k_x, k_p, k_x2, k_x3, k_p3 = jax.random.split(key, 5)

    # Small shapes consistent with MiddleModel(input_size=32).
    batch, input_size = 8, 32
    x = jax.random.normal(k_x, (batch, input_size), dtype=jnp.float32)
    weight, bias = init_params(input_size, k_p)

    out = jax.block_until_ready(middle_model_forward(x, weight, bias))
    ref = jnp.maximum(x @ weight.T + bias, 0.0)
    assert out.shape == (batch, input_size)
    assert jnp.allclose(out, ref, atol=1e-5, rtol=1e-5)

    # Irregular shapes + bf16 activations exercise padding and the in-kernel cast.
    b2, f2 = 5, 20
    x2 = jax.random.normal(k_x2, (b2, f2), dtype=jnp.bfloat16)
    w2, bb2 = init_params(f2, k_p)
    out2 = jax.block_until_ready(middle_model_forward(x2, w2, bb2))
    ref2 = jnp.maximum(x2.astype(jnp.float32) @ w2.T + bb2, 0.0)
    assert out2.shape == (b2, f2)
    assert jnp.allclose(out2, ref2, atol=2e-2, rtol=2e-2)  # bf16 input precision

    # Both-bf16 operands exercise the native-bf16 MXU fast path.
    b3, f3 = 16, 64
    x3 = jax.random.normal(k_x3, (b3, f3), dtype=jnp.bfloat16)
    w3, bb3 = init_params(f3, k_p3)
    w3_bf16 = w3.astype(jnp.bfloat16)
    out3 = jax.block_until_ready(middle_model_forward(x3, w3_bf16, bb3))
    ref3 = jnp.maximum(
        x3.astype(jnp.float32) @ w3_bf16.astype(jnp.float32).T + bb3, 0.0)
    assert out3.shape == (b3, f3)
    assert jnp.allclose(out3, ref3, atol=3e-2, rtol=3e-2)

    print("KERNEL_OK")
</pallas_src>

<mosaic_0001>
module attributes {stable_mosaic.version = 11 : i64} {
  func.func @dense_relu_kernel(%arg0: i32, %arg1: i32, %arg2: i32, %arg3: memref<8x128xf32, #tpu.memory_space<vmem>>, %arg4: memref<128x128xf32, #tpu.memory_space<vmem>>, %arg5: memref<1x128xf32, #tpu.memory_space<vmem>>, %arg6: memref<8x128xf32, #tpu.memory_space<vmem>>) attributes {dimension_semantics = [#tpu.dimension_semantics<parallel>, #tpu.dimension_semantics<parallel>, #tpu.dimension_semantics<arbitrary>], iteration_bounds = array<i64: 1, 1, 1>, scalar_prefetch = 0 : i64, scratch_operands = 0 : i64, tpu.core_type = #tpu.core_type<tc>, window_params = [{transform_indices = @transform_0, window_bounds = array<i64: 8, 128>}, {transform_indices = @transform_1, window_bounds = array<i64: 128, 128>}, {transform_indices = @transform_2, window_bounds = array<i64: 1, 128>}, {transform_indices = @transform_3, window_bounds = array<i64: 8, 128>}]} {
    %c0_i32 = arith.constant 0 : i32
    %0 = arith.cmpi eq, %arg2, %c0_i32 : i32
    %1 = arith.extui %0 : i1 to i32
    %c0_i32_0 = arith.constant 0 : i32
    %2 = arith.cmpi ne, %1, %c0_i32_0 : i32
    scf.if %2 {
      %cst_10 = arith.constant 0.000000e+00 : f32
      %12 = vector.broadcast %cst_10 : f32 to vector<8x128xf32>
      %c0_11 = arith.constant 0 : index
      %c0_12 = arith.constant 0 : index
      %13 = vector.load %arg6[%c0_11, %c0_12] : memref<8x128xf32, #tpu.memory_space<vmem>>, vector<8x128xf32>
      tpu.vector_store %arg6[%c0_11, %c0_12], %12 {strides = array<i32>} : memref<8x128xf32, #tpu.memory_space<vmem>>, vector<8x128xf32>,
    } else {
    }
    %c0 = arith.constant 0 : index
    %c0_1 = arith.constant 0 : index
    %3 = vector.load %arg3[%c0, %c0_1] : memref<8x128xf32, #tpu.memory_space<vmem>>, vector<8x128xf32>
    %c0_2 = arith.constant 0 : index
    %c0_3 = arith.constant 0 : index
    %4 = vector.load %arg4[%c0_2, %c0_3] : memref<128x128xf32, #tpu.memory_space<vmem>>, vector<128x128xf32>
    %c0_4 = arith.constant 0 : index
    %c0_5 = arith.constant 0 : index
    %5 = vector.load %arg6[%c0_4, %c0_5] : memref<8x128xf32, #tpu.memory_space<vmem>>, vector<8x128xf32>
    %cst = arith.constant dense<0.000000e+00> : vector<8x128xf32>
    %6 = tpu.matmul %3, %4, %cst {dimension_numbers = #tpu.dot_dimension_numbers<[1], [0], [0], [1], [0, 0, 1, 1], [], []>} : vector<8x128xf32>, vector<128x128xf32>, vector<8x128xf32> -> vector<8x128xf32>
    %7 = arith.addf %5, %6 : vector<8x128xf32>
    %c0_6 = arith.constant 0 : index
    %c0_7 = arith.constant 0 : index
    %8 = vector.load %arg6[%c0_6, %c0_7] : memref<8x128xf32, #tpu.memory_space<vmem>>, vector<8x128xf32>
    tpu.vector_store %arg6[%c0_6, %c0_7], %7 {strides = array<i32>} : memref<8x128xf32, #tpu.memory_space<vmem>>, vector<8x128xf32>,
    %c0_i32_8 = arith.constant 0 : i32
    %9 = arith.cmpi eq, %arg2, %c0_i32_8 : i32
    %10 = arith.extui %9 : i1 to i32
    %c0_i32_9 = arith.constant 0 : i32
    %11 = arith.cmpi ne, %10, %c0_i32_9 : i32
    scf.if %11 {
      %c0_10 = arith.constant 0 : index
      %c0_11 = arith.constant 0 : index
      %12 = vector.load %arg6[%c0_10, %c0_11] : memref<8x128xf32, #tpu.memory_space<vmem>>, vector<8x128xf32>
      %c0_12 = arith.constant 0 : index
      %c0_13 = arith.constant 0 : index
      %13 = vector.load %arg5[%c0_12, %c0_13] : memref<1x128xf32, #tpu.memory_space<vmem>>, vector<1x128xf32>
      %14 = vector.broadcast %13 : vector<1x128xf32> to vector<8x128xf32>
      %15 = arith.addf %12, %14 : vector<8x128xf32>
      %cst_14 = arith.constant 0.000000e+00 : f32
      %16 = vector.broadcast %cst_14 : f32 to vector<8x128xf32>
      %17 = arith.maximumf %15, %16 : vector<8x128xf32>
      %c0_15 = arith.constant 0 : index
      %c0_16 = arith.constant 0 : index
      %18 = vector.load %arg6[%c0_15, %c0_16] : memref<8x128xf32, #tpu.memory_space<vmem>>, vector<8x128xf32>
      tpu.vector_store %arg6[%c0_15, %c0_16], %17 {strides = array<i32>} : memref<8x128xf32, #tpu.memory_space<vmem>>, vector<8x128xf32>,
    } else {
    }
    return
  }
  func.func @transform_0(%arg0: i32, %arg1: i32, %arg2: i32) -> (i32, i32) {
    %c0_i32 = arith.constant 0 : i32
    return %arg0, %arg2 : i32, i32
  }
  func.func @transform_1(%arg0: i32, %arg1: i32, %arg2: i32) -> (i32, i32) {
    %c0_i32 = arith.constant 0 : i32
    return %arg2, %arg1 : i32, i32
  }
  func.func @transform_2(%arg0: i32, %arg1: i32, %arg2: i32) -> (i32, i32) {
    %c0_i32 = arith.constant 0 : i32
    %c0_i32_0 = arith.constant 0 : i32
    return %c0_i32, %arg1 : i32, i32
  }
  func.func @transform_3(%arg0: i32, %arg1: i32, %arg2: i32) -> (i32, i32) {
    %c0_i32 = arith.constant 0 : i32
    return %arg0, %arg1 : i32, i32
  }
}

</mosaic_0001>

<bundles_post_ra>
// kernel: _forward_impl.1
= control target key start
LH: loop header
LB: loop body
LE: loop exit
PB: predicated region body
PF: predicated region fallthrough
CT: control target
= control target key end

     0   :  { %s194_s0 = inlined_call_operand.vmem [shape: f32[8,128], index: 0, kind: input, shape index: {}]   ;;  %s195_s1 = inlined_call_operand.vmem [shape: f32[128,128], index: 1, kind: input, shape index: {}]   ;;  %s196_s2 = inlined_call_operand.vmem [shape: f32[1,128], index: 2, kind: input, shape index: {}]   ;;  %s197_s3 = inlined_call_operand.hbm [shape: f32[8,128], index: 3, kind: output, shape index: {}]  }
   0x1   :  { %v36_v0 = vld [vmem:[%s195_s1 + $0x78] sm:$0xff]  ;;  %v35_v1 = vld [vmem:[%s195_s1 + $0x70] sm:$0xff]  ;;  %v34_v2 = vld [vmem:[%s195_s1 + $0x68] sm:$0xff] }
   0x2   :  { %38 = vmatpush.msra.mxu0 %v36_v0  ;;  %v33_v3 = vld [vmem:[%s195_s1 + $0x60] sm:$0xff] }
   0x4   :  { %39 = vmatpush.msra.mxu0 %v35_v1 }
   0x6   :  { %40 = vmatpush.msra.mxu0 %v34_v2 }
   0x7   :  { %8 = vsyncpa [#allocation3], 0  ;;  %v32_v4 = vld [vmem:[%s195_s1 + $0x58] sm:$0xff]  ;;  %v31_v5 = vld [vmem:[%s195_s1 + $0x50] sm:$0xff]  ;;  %s116_s21 = smov [#allocation2]   ;;  %s78_s25 = sshll.u32 %s197_s3, 4  ;;  %s79_s25 = int_to_ptr.hbm [resolvable:$true] %s78_s25 }
   0x8   :  { %41 = vmatpush.msra.mxu0 %v33_v3  ;;  %v30_v6 = vld [vmem:[%s195_s1 + $0x48] sm:$0xff]  ;;  %v29_v7 = vld [vmem:[%s195_s1 + $0x40] sm:$0xff]  ;;  %v28_v8 = vld [vmem:[%s195_s1 + $0x38] sm:$0xff]  ;;  %s76_s22 = sshll.u32 %s116_s21, 4  ;;  %s77_s22 = int_to_ptr.vmem [resolvable:$true] %s76_s22 }
   0x9   :  { %v27_v9 = vld [vmem:[%s195_s1 + $0x30] sm:$0xff]  ;;  %v26_v10 = vld [vmem:[%s195_s1 + $0x28] sm:$0xff]  ;;  %v25_v11 = vld [vmem:[%s195_s1 + $0x20] sm:$0xff] }
   0xa   :  { %42 = vmatpush.msra.mxu0 %v32_v4  ;;  %v24_v12 = vld [vmem:[%s195_s1 + $0x18] sm:$0xff]  ;;  %v23_v13 = vld [vmem:[%s195_s1 + $0x10] sm:$0xff]  ;;  %v22_v14 = vld [vmem:[%s195_s1 + $0x8] sm:$0xff] }
   0xb   :  { %v21_v15 = vld [vmem:[%s195_s1] sm:$0xff] }
   0xc   :  { %43 = vmatpush.msra.mxu0 %v31_v5  ;;  %v20_v16 = vld [vmem:[%s194_s0] sm:$0xff] }
   0xd   :  { %v89_v17 = vld [vmem:[%s196_s2] ss:$0 sm:$0xff] }
   0xe   :  { %44 = vmatpush.msra.mxu0 %v30_v6 }
  0x10   :  { %45 = vmatpush.msra.mxu0 %v29_v7 }
  0x12   :  { %46 = vmatpush.msra.mxu0 %v28_v8 }
  0x14   :  { %47 = vmatpush.msra.mxu0 %v27_v9 }
  0x16   :  { %48 = vmatpush.msra.mxu0 %v26_v10 }
  0x18   :  { %49 = vmatpush.msra.mxu0 %v25_v11 }
  0x1a   :  { %50 = vmatpush.msra.mxu0 %v24_v12 }
  0x1c   :  { %51 = vmatpush.msra.mxu0 %v23_v13 }
  0x1e   :  { %52 = vmatpush.msra.mxu0 %v22_v14 }
  0x20   :  { %53 = vmatpush.msra.mxu0 %v21_v15 }
  0x21   :  { %54 = vmatmul.f32.vlgmr.msra.gmra.mxu0 %v20_v16 }
  0x9e   :  { %v55_v18 = vpop.f32.mrf.mxu0 }
  0x9f   :  { %v68_v19 = vadd.f32 %v89_v17, %v55_v18 }
  0xa1   :  { %v69_v20 = vmax.f32 %v68_v19, 0.0 }
  0xa3   :  { %70 = vst [vmem:[#allocation2] sm:$0xff] %v69_v20 }
  0xa4   :  { %81 = dma.vmem_to_hbm [thread:$0]  %s77_s22, 128, %s79_s25, [#allocation3]  }
  0xa5   :  { %114 = dma.done.wait [#allocation3], 128  }
  0xa6   :  { %115 = vsyncadd [#allocation3], 4294967168 }
  0xa7   :  { %86 = vsyncpa [#allocation3], 1 }

</bundles_post_ra>
